<compile_context>
chip_gen: v6e
topology: v6e:2x2x1
jax: 0.10.0
libtpu: 0.0.40
codegen_flags: <defaults>
</compile_context>

<pallas_src>
import jax
import jax.numpy as jnp
from jax.experimental import pallas as pl
from jax.experimental.pallas import tpu as pltpu


def _mlp_kernel(x_ref, w1_ref, b1_ref, w2_ref, b2_ref, w3_ref, b3_ref, o_ref):
    x = x_ref[...]                                   # (10, TB)
    # hidden1: (16,10) @ (10,TB) + (16,1) -> ReLU
    h1 = jnp.dot(w1_ref[...], x, preferred_element_type=jnp.float32) + b1_ref[...]
    h1 = jnp.maximum(h1, 0.0)
    # hidden2: (10,16) @ (16,TB) + (10,1) -> ReLU
    h2 = jnp.dot(w2_ref[...], h1, preferred_element_type=jnp.float32) + b2_ref[...]
    h2 = jnp.maximum(h2, 0.0)
    # output:  (4,10) @ (10,TB) + (4,1) -> Sigmoid (exp goes to EUP, cheap)
    z = jnp.dot(w3_ref[...], h2, preferred_element_type=jnp.float32) + b3_ref[...]
    o_ref[...] = jax.nn.sigmoid(z).astype(o_ref.dtype)


def _round_up(v, m):
    return ((v + m - 1) // m) * m


def genetic_nn_forward_fm(xt, w1, b1, w2, b2, w3, b3, *, tb=16384):
    """Feature-major fused forward pass (zero wrapper layout overhead).

    xt: (10, B) float32   (batch on the trailing / lane axis)
    w1: (16, 10), b1: (16,)   (PyTorch nn.Linear storage order)
    w2: (10, 16), b2: (10,)
    w3: (4, 10),  b3: (4,)
    returns (4, B) float32
    """
    in_f, B = xt.shape
    assert in_f == 10, f"expected 10 input features, got {in_f}"
    assert tb >= 128 and tb % 128 == 0, "tb must be a positive multiple of 128"

    # Batch tile: lane-aligned (multiple of 128), as large as the budget allows.
    Bp = _round_up(max(B, 1), 128)
    TB = min(tb, Bp)
    # Keep >= 2 grid steps when the batch allows it so both v7x TensorCores
    # get work under dimension_semantics=("parallel",).
    if TB == Bp and Bp >= 256:
        TB = _round_up(Bp // 2, 128)
    num_tiles = pl.cdiv(B, TB)

    # VMEM budget: double-buffered (10,TB)+(4,TB) f32 tiles, (16,TB)/(10,TB)/(4,TB)
    # f32 intermediates, plus spill headroom. Cap below v7x's 64 MiB physical VMEM.
    vmem_need = 320 * TB + (2 << 20)
    vmem_limit = int(min(max(vmem_need, 16 << 20), 56 << 20))

    xt = xt.astype(jnp.float32)
    w1 = w1.astype(jnp.float32)
    w2 = w2.astype(jnp.float32)
    w3 = w3.astype(jnp.float32)
    b1c = b1.reshape(-1, 1).astype(jnp.float32)
    b2c = b2.reshape(-1, 1).astype(jnp.float32)
    b3c = b3.reshape(-1, 1).astype(jnp.float32)

    # Weights / biases are resident: full-size block, constant index_map.
    resident = lambda shape: pl.BlockSpec(shape, lambda i: (0, 0))

    out_t = pl.pallas_call(
        _mlp_kernel,
        out_shape=jax.ShapeDtypeStruct((4, B), jnp.float32),
        grid=(num_tiles,),
        in_specs=[
            pl.BlockSpec((10, TB), lambda i: (0, i)),   # x tile: batch on lanes
            resident(w1.shape), resident(b1c.shape),
            resident(w2.shape), resident(b2c.shape),
            resident(w3.shape), resident(b3c.shape),
        ],
        out_specs=pl.BlockSpec((4, TB), lambda i: (0, i)),
        compiler_params=pltpu.CompilerParams(
            dimension_semantics=("parallel",),
            vmem_limit_bytes=vmem_limit,
        ),
    )(xt, w1, b1c, w2, b2c, w3, b3c)

    return out_t


def genetic_nn_forward(x, w1, b1, w2, b2, w3, b3, *, tb=16384):
    """Torch-compatible forward: x (B, 10) -> (B, 4).

    Thin wrapper that transposes at the boundary; callers that can work in
    feature-major form should use `genetic_nn_forward_fm` directly to avoid
    the two layout passes.
    """
    out_t = genetic_nn_forward_fm(x.T, w1, b1, w2, b2, w3, b3, tb=tb)
    return out_t.T


def init_params(key):
    """Deterministic init mimicking nn.Linear's uniform(-1/sqrt(fan_in), 1/sqrt(fan_in)).

    Weights in PyTorch layout: (out_features, in_features); biases (out_features,).
    """
    dims = [(10, 16), (16, 10), (10, 4)]  # (fan_in, fan_out) per layer
    params = []
    for (fan_in, fan_out) in dims:
        key, kw, kb = jax.random.split(key, 3)
        bound = 1.0 / jnp.sqrt(jnp.float32(fan_in))
        w = jax.random.uniform(kw, (fan_out, fan_in), jnp.float32, -bound, bound)
        b = jax.random.uniform(kb, (fan_out,), jnp.float32, -bound, bound)
        params.extend([w, b])
    return params


def reference_forward(x, w1, b1, w2, b2, w3, b3):
    h1 = jnp.maximum(x @ w1.T + b1, 0.0)
    h2 = jnp.maximum(h1 @ w2.T + b2, 0.0)
    return jax.nn.sigmoid(h2 @ w3.T + b3)


# TODO(synk): clone / mutate / speciate / cross are host-side evolutionary-algorithm
# utilities (deepcopy + RNG perturbation of parameters), not part of the forward
# pass; they are intentionally not implemented as kernels.

if __name__ == "__main__":
    key = jax.random.PRNGKey(0)
    key, kx = jax.random.split(key)
    B = 8
    x = jax.random.normal(kx, (B, 10), jnp.float32)
    w1, b1, w2, b2, w3, b3 = init_params(key)

    out = genetic_nn_forward(x, w1, b1, w2, b2, w3, b3)
    out = jax.block_until_ready(out)
    ref = reference_forward(x, w1, b1, w2, b2, w3, b3)
    assert out.shape == (B, 4)
    assert jnp.allclose(out, ref, atol=1e-5, rtol=1e-5)

    # Batch that spans multiple tiles and is not lane/tile aligned (ragged last block).
    key, kx2 = jax.random.split(key)
    B2 = 1300
    x2 = jax.random.normal(kx2, (B2, 10), jnp.float32)
    out2 = jax.block_until_ready(genetic_nn_forward(x2, w1, b1, w2, b2, w3, b3))
    ref2 = reference_forward(x2, w1, b1, w2, b2, w3, b3)
    assert out2.shape == (B2, 4)
    assert jnp.allclose(out2, ref2, atol=1e-5, rtol=1e-5)

    # Feature-major entry point (no wrapper transposes) matches as well.
    out3 = jax.block_until_ready(
        genetic_nn_forward_fm(x2.T, w1, b1, w2, b2, w3, b3))
    assert out3.shape == (4, B2)
    assert jnp.allclose(out3.T, ref2, atol=1e-5, rtol=1e-5)

    print("KERNEL_OK")
</pallas_src>

<mosaic_0001>
module attributes {stable_mosaic.version = 11 : i64} {
  func.func @_mlp_kernel(%arg0: i32, %arg1: memref<10x128xf32, #tpu.memory_space<vmem>>, %arg2: memref<16x10xf32, #tpu.memory_space<vmem>>, %arg3: memref<16x1xf32, #tpu.memory_space<vmem>>, %arg4: memref<10x16xf32, #tpu.memory_space<vmem>>, %arg5: memref<10x1xf32, #tpu.memory_space<vmem>>, %arg6: memref<4x10xf32, #tpu.memory_space<vmem>>, %arg7: memref<4x1xf32, #tpu.memory_space<vmem>>, %arg8: memref<4x128xf32, #tpu.memory_space<vmem>>) attributes {dimension_semantics = [#tpu.dimension_semantics<parallel>], iteration_bounds = array<i64: 1>, scalar_prefetch = 0 : i64, scratch_operands = 0 : i64, tpu.core_type = #tpu.core_type<tc>, window_params = [{transform_indices = @transform_0, window_bounds = array<i64: 10, 128>}, {pipeline_mode = #tpu.pipeline_mode<synchronous>, transform_indices = @transform_1, window_bounds = array<i64: 16, 10>}, {pipeline_mode = #tpu.pipeline_mode<synchronous>, transform_indices = @transform_2, window_bounds = array<i64: 16, 1>}, {pipeline_mode = #tpu.pipeline_mode<synchronous>, transform_indices = @transform_3, window_bounds = array<i64: 10, 16>}, {pipeline_mode = #tpu.pipeline_mode<synchronous>, transform_indices = @transform_4, window_bounds = array<i64: 10, 1>}, {pipeline_mode = #tpu.pipeline_mode<synchronous>, transform_indices = @transform_5, window_bounds = array<i64: 4, 10>}, {pipeline_mode = #tpu.pipeline_mode<synchronous>, transform_indices = @transform_6, window_bounds = array<i64: 4, 1>}, {transform_indices = @transform_7, window_bounds = array<i64: 4, 128>}]} {
    %c0 = arith.constant 0 : index
    %c0_0 = arith.constant 0 : index
    %0 = vector.load %arg1[%c0, %c0_0] : memref<10x128xf32, #tpu.memory_space<vmem>>, vector<10x128xf32>
    %c0_1 = arith.constant 0 : index
    %c0_2 = arith.constant 0 : index
    %1 = vector.load %arg2[%c0_1, %c0_2] : memref<16x10xf32, #tpu.memory_space<vmem>>, vector<16x10xf32>
    %cst = arith.constant dense<0.000000e+00> : vector<16x128xf32>
    %2 = tpu.matmul %1, %0, %cst {dimension_numbers = #tpu.dot_dimension_numbers<[1], [0], [0], [1], [0, 0, 1, 1], [], []>} : vector<16x10xf32>, vector<10x128xf32>, vector<16x128xf32> -> vector<16x128xf32>
    %c0_3 = arith.constant 0 : index
    %c0_4 = arith.constant 0 : index
    %3 = vector.load %arg3[%c0_3, %c0_4] : memref<16x1xf32, #tpu.memory_space<vmem>>, vector<16x1xf32>
    %4 = vector.broadcast %3 : vector<16x1xf32> to vector<16x128xf32>
    %5 = arith.addf %2, %4 : vector<16x128xf32>
    %cst_5 = arith.constant 0.000000e+00 : f32
    %6 = vector.broadcast %cst_5 : f32 to vector<16x128xf32>
    %7 = arith.maximumf %5, %6 : vector<16x128xf32>
    %c0_6 = arith.constant 0 : index
    %c0_7 = arith.constant 0 : index
    %8 = vector.load %arg4[%c0_6, %c0_7] : memref<10x16xf32, #tpu.memory_space<vmem>>, vector<10x16xf32>
    %cst_8 = arith.constant dense<0.000000e+00> : vector<10x128xf32>
    %9 = tpu.matmul %8, %7, %cst_8 {dimension_numbers = #tpu.dot_dimension_numbers<[1], [0], [0], [1], [0, 0, 1, 1], [], []>} : vector<10x16xf32>, vector<16x128xf32>, vector<10x128xf32> -> vector<10x128xf32>
    %c0_9 = arith.constant 0 : index
    %c0_10 = arith.constant 0 : index
    %10 = vector.load %arg5[%c0_9, %c0_10] : memref<10x1xf32, #tpu.memory_space<vmem>>, vector<10x1xf32>
    %11 = vector.broadcast %10 : vector<10x1xf32> to vector<10x128xf32>
    %12 = arith.addf %9, %11 : vector<10x128xf32>
    %cst_11 = arith.constant 0.000000e+00 : f32
    %13 = vector.broadcast %cst_11 : f32 to vector<10x128xf32>
    %14 = arith.maximumf %12, %13 : vector<10x128xf32>
    %c0_12 = arith.constant 0 : index
    %c0_13 = arith.constant 0 : index
    %15 = vector.load %arg6[%c0_12, %c0_13] : memref<4x10xf32, #tpu.memory_space<vmem>>, vector<4x10xf32>
    %cst_14 = arith.constant dense<0.000000e+00> : vector<4x128xf32>
    %16 = tpu.matmul %15, %14, %cst_14 {dimension_numbers = #tpu.dot_dimension_numbers<[1], [0], [0], [1], [0, 0, 1, 1], [], []>} : vector<4x10xf32>, vector<10x128xf32>, vector<4x128xf32> -> vector<4x128xf32>
    %c0_15 = arith.constant 0 : index
    %c0_16 = arith.constant 0 : index
    %17 = vector.load %arg7[%c0_15, %c0_16] : memref<4x1xf32, #tpu.memory_space<vmem>>, vector<4x1xf32>
    %18 = vector.broadcast %17 : vector<4x1xf32> to vector<4x128xf32>
    %19 = arith.addf %16, %18 : vector<4x128xf32>
    %20 = arith.negf %19 : vector<4x128xf32>
    %21 = math.exp %20 : vector<4x128xf32>
    %cst_17 = arith.constant 1.000000e+00 : f32
    %22 = vector.broadcast %cst_17 : f32 to vector<4x128xf32>
    %23 = arith.addf %22, %21 : vector<4x128xf32>
    %24 = arith.divf %22, %23 : vector<4x128xf32>
    %c0_18 = arith.constant 0 : index
    %c0_19 = arith.constant 0 : index
    %25 = vector.load %arg8[%c0_18, %c0_19] : memref<4x128xf32, #tpu.memory_space<vmem>>, vector<4x128xf32>
    tpu.vector_store %arg8[%c0_18, %c0_19], %24 {strides = array<i32>} : memref<4x128xf32, #tpu.memory_space<vmem>>, vector<4x128xf32>,
    return
  }
  func.func @transform_0(%arg0: i32) -> (i32, i32) {
    %c0_i32 = arith.constant 0 : i32
    %c0_i32_0 = arith.constant 0 : i32
    return %c0_i32, %arg0 : i32, i32
  }
  func.func @transform_1(%arg0: i32) -> (i32, i32) {
    %c0_i32 = arith.constant 0 : i32
    %c0_i32_0 = arith.constant 0 : i32
    %c0_i32_1 = arith.constant 0 : i32
    return %c0_i32, %c0_i32_0 : i32, i32
  }
  func.func @transform_2(%arg0: i32) -> (i32, i32) {
    %c0_i32 = arith.constant 0 : i32
    %c0_i32_0 = arith.constant 0 : i32
    %c0_i32_1 = arith.constant 0 : i32
    return %c0_i32, %c0_i32_0 : i32, i32
  }
  func.func @transform_3(%arg0: i32) -> (i32, i32) {
    %c0_i32 = arith.constant 0 : i32
    %c0_i32_0 = arith.constant 0 : i32
    %c0_i32_1 = arith.constant 0 : i32
    return %c0_i32, %c0_i32_0 : i32, i32
  }
  func.func @transform_4(%arg0: i32) -> (i32, i32) {
    %c0_i32 = arith.constant 0 : i32
    %c0_i32_0 = arith.constant 0 : i32
    %c0_i32_1 = arith.constant 0 : i32
    return %c0_i32, %c0_i32_0 : i32, i32
  }
  func.func @transform_5(%arg0: i32) -> (i32, i32) {
    %c0_i32 = arith.constant 0 : i32
    %c0_i32_0 = arith.constant 0 : i32
    %c0_i32_1 = arith.constant 0 : i32
    return %c0_i32, %c0_i32_0 : i32, i32
  }
  func.func @transform_6(%arg0: i32) -> (i32, i32) {
    %c0_i32 = arith.constant 0 : i32
    %c0_i32_0 = arith.constant 0 : i32
    %c0_i32_1 = arith.constant 0 : i32
    return %c0_i32, %c0_i32_0 : i32, i32
  }
  func.func @transform_7(%arg0: i32) -> (i32, i32) {
    %c0_i32 = arith.constant 0 : i32
    %c0_i32_0 = arith.constant 0 : i32
    return %c0_i32, %arg0 : i32, i32
  }
}

</mosaic_0001>

<bundles_post_ra>
// kernel: tpu_custom_call.1
= control target key start
LH: loop header
LB: loop body
LE: loop exit
PB: predicated region body
PF: predicated region fallthrough
CT: control target
= control target key end

     0   :  { %vm50_vm0 = vcmask 1041408   ;;  %vm43_vm1 = vcmask 80896   ;;  %v405_v5 = vmov 0   ;;  %s496_s0 = inlined_call_operand.vmem [shape: f32[10,8], index: 0, kind: input, shape index: {}]   ;;  %s497_s1 = inlined_call_operand.vmem [shape: f32[16,10], index: 1, kind: input, shape index: {}]   ;;  %s498_s2 = inlined_call_operand.vmem [shape: f32[16,1], index: 2, kind: input, shape index: {}]   ;;  %s499_s3 = inlined_call_operand.vmem [shape: f32[10,16], index: 3, kind: input, shape index: {}]   ;;  %s500_s4 = inlined_call_operand.vmem [shape: f32[10,1], index: 4, kind: input, shape index: {}]   ;;  %s501_s5 = inlined_call_operand.vmem [shape: f32[4,10], index: 5, kind: input, shape index: {}]   ;;  %s502_s6 = inlined_call_operand.vmem [shape: f32[4,1], index: 6, kind: input, shape index: {}]   ;;  %s503_s7 = inlined_call_operand.hbm [shape: f32[4,8], index: 7, kind: output, shape index: {}]  }
   0x1   :  { %v28_v0 = vld [vmem:[%s496_s0 + $0x8] sm:$0x3]  ;;  %v27_v1 = vld [vmem:[%s496_s0] sm:$0xff]  ;;  %377 = vset.pattern.permute.xlu0 %v405_v5 }
   0x2   :  { %v29_v2 = vld [vmem:[%s497_s1] sm:$0xff]  ;;  %352 = vmatprep.subr.msk.mxu0 %vm50_vm0, %v28_v0  ;;  %v32_v3 = vld [vmem:[%s498_s2 + $0x8] sm:$0xff] }
   0x3   :  { %356 = vmatprep.mubr.msk.f32.mxu0 %vm43_vm1, %v29_v2  ;;  %353 = vmatpush3.msk.msra.mxu0 %vm50_vm0, %v28_v0  ;;  %v30_v4 = vld [vmem:[%s497_s1 + $0x8] sm:$0xff] }
   0x4   :  { %12 = vsyncpa [#allocation3], 0  ;;  %354 = vmatprep.subr.mxu0 %v27_v1  ;;  %40 = vperm.xlu0 %377, %v32_v3   ;;  %v31_v6 = vld [vmem:[%s498_s2] sm:$0xff]  ;;  %vm145_vm2 = vcmask 130048   ;;  %v134_v9 = vld [vmem:[%s500_s4 + $0x8] sm:$0x3] }
   0x5   :  { %355 = vmatpush3.msra.mxu0 %v27_v1  ;;  %378 = vset.pattern.permute.xlu1 %v405_v5  ;;  %v230_v7 = vld [vmem:[%s502_s6] sm:$0xf]  ;;  %v132_v19 = vld [vmem:[%s499_s3 + $0x8] sm:$0x3]  ;;  %v406_v20 = vmov 0.0   ;;  %vm407_vm3 = vmmov 0  }
   0x6   :  { %357 = vmatmul.mubr.msk.f32.vlgmr.msra.gmra.mxu0 %vm43_vm1, %v30_v4  ;;  %v131_v8 = vld [vmem:[%s499_s3] sm:$0xff]  ;;  %142 = vperm.xlu1 %378, %v134_v9   ;;  %s408_s19 = smov [#allocation2]  }
   0x7   :  { %363 = vmatprep.mubr.msk.f32.mxu1 %vm145_vm2, %v131_v8  ;;  %v133_v10 = vld [vmem:[%s500_s4] sm:$0xff]  ;;  %366 = vmatprep.subr.mxu0 %v406_v20  ;;  %s325_s20 = sshll.u32 %s408_s19, 4  ;;  %s326_s20 = int_to_ptr.vmem [resolvable:$true] %s325_s20 }
   0x8   :  { %35 = vperm.xlu0 %377, %v31_v6   ;;  %370 = vmatprep.mubr.msk.f32.mxu0 %vm407_vm3, %v406_v20  ;;  %v229_v29 = vld [vmem:[%s501_s5] sm:$0xf]  ;;  %s383_s21 = scalar_lea.vmem %s326_s20, 64  ;;  %p388_p1 = scmp.lt.s32.totalorder %s326_s20, %s326_s20 }
   0x9   :  { %p384_p0 = scmp.ne.s32.totalorder %s326_s20, %s383_s21  ;;  %p389_p2 = scmp.lt.s32.totalorder %s383_s21, %s383_s21 }
   0xa   :  { %137 = vperm.xlu1 %378, %v133_v10  }
   0xb   :  { %p390_p3 = por %p389_p2, %p388_p1 }
   0xc   :  { %233 = vperm.xlu0 %377, %v230_v7  }
   0xd   :  { %p391_p4 = pnand %p390_p3, %p384_p0 }
  0x7f   :  { %v41_v11 = vpop.permute.xlu0 %40 }
  0x81   :  { %v143_v21 = vpop.permute.xlu1 %142 }
  0x83   :  { %v36_v14 = vpop.permute.xlu0 %35 }
  0x85   :  { %v138_v24 = vpop.permute.xlu1 %137 }
  0x87   :  { %v234_v30 = vpop.permute.xlu0 %233 }
  0xc6   :  { %v358_v12 = vpop.f32.mrf.mxu0 }
  0xc7   :  { %v126_v13 = vadd.f32 %v358_v12, %v41_v11 }
  0xc8   :  { %v120_v15 = vpop.f32.mrf.mxu0 }
  0xc9   :  { %v130_v16 = vmax.f32 %v126_v13, 0.0  ;;  %v121_v17 = vadd.f32 %v120_v15, %v36_v14 }
  0xcb   :  { %v129_v18 = vmax.f32 %v121_v17, 0.0  ;;  %359 = vmatprep.subr.mxu1 %v130_v16 }
  0xcc   :  { %360 = vmatpush3.msra.mxu1 %v130_v16 }
  0xcd   :  { %361 = vmatprep.subr.mxu1 %v129_v18 }
  0xce   :  { %362 = vmatpush3.msra.mxu1 %v129_v18 }
  0xcf   :  { %364 = vmatmul.mubr.msk.f32.vlgmr.msra.gmra.mxu1 %vm145_vm2, %v132_v19 }
 0x18f   :  { %v365_v22 = vpop.f32.mrf.mxu1 }
 0x190   :  { %v224_v23 = vadd.f32 %v365_v22, %v143_v21 }
 0x191   :  { %v218_v25 = vpop.f32.mrf.mxu1 }
 0x192   :  { %v228_v26 = vmax.f32 %v224_v23, 0.0  ;;  %v219_v27 = vadd.f32 %v218_v25, %v138_v24 }
 0x194   :  { %v227_v28 = vmax.f32 %v219_v27, 0.0  ;;  %367 = vmatpush3.msk.msra.mxu0 %vm50_vm0, %v228_v26 }
 0x195   :  { %368 = vmatprep.subr.mxu0 %v406_v20 }
 0x196   :  { %369 = vmatpush3.msra.mxu0 %v227_v28 }
 0x197   :  { %371 = vmatmul.mubr.msk.f32.vlgmr.msra.gmra.mxu0 %vm43_vm1, %v229_v29 }
 0x257   :  { %v308_v31 = vpop.f32.mrf.mxu0 }
 0x258   :  { %v309_v32 = vadd.f32 %v308_v31, %v234_v30 }
 0x259   :  { %v372_v33 = vpop.f32.mrf.mxu0 }
 0x25a   :  { %v340_v34 = vmul.f32 -1.442695, %v309_v32 }
 0x25c   :  { %379 = vpow2.f32 %v340_v34 }
 0x269   :  { %v380_v35 = vpop.eup %379 }
 0x26a   :  { %v315_v36 = vadd.f32 1.0, %v380_v35 }
 0x26c   :  { %381 = vrcp.f32 %v315_v36 }
 0x279   :  { %v382_v37 = vpop.eup %381 }
 0x27a   :  { %318 = vst [vmem:[#allocation2] sm:$0xf] %v382_v37 }
 0x27b   :  { %394 = shalt.err (!%p391_p4)
}
 0x27c   :  { %328 = dma.vmem_to_hbm [thread:$0]  %s326_s20, 64, %s503_s7, [#allocation3]  }
 0x27d   :  { %403 = dma.done.wait [#allocation3], 64  }
 0x27e   :  { %404 = vsyncadd [#allocation3], 4294967232 }
 0x27f   :  { %332 = vsyncpa [#allocation3], 1 }

</bundles_post_ra>
